<compile_context>
chip_gen: v7x
topology: tpu7x:2x2x1
jax: 0.10.0
libtpu: 0.0.40
codegen_flags: <defaults>
</compile_context>

<pallas_src>
import functools

import jax
import jax.numpy as jnp
from jax.experimental import pallas as pl
from jax.experimental.pallas import tpu as pltpu


def _round_up(x, m):
    return (x + m - 1) // m * m


def fused_basic_blocks_kernel(x_ref, w_ref, mask_ref, o_ref, patch_ref,
                              *, W, Cp, compute_dtype):
    """One grid step = (image-tile n, layer l).

    x_ref:     (1, Cp, Lf)      input image tile (consumed only at l == 0)
    w_ref:     (L, Cp, 9*Cp)    ALL layer weights, VMEM-resident (const index map)
    mask_ref:  (4, Lf)          boundary masks [y>=1, y<=H-2, x>=1, x<=W-2]
    o_ref:     (1, Cp, Lf)      output tile == layer-resident activation
    patch_ref: VMEM (9*Cp, Lf)  im2col patch matrix (compute dtype)
    """
    l = pl.program_id(1)
    Lf = patch_ref.shape[1]

    # First layer of this image tile: seed the resident activation.
    @pl.when(l == 0)
    def _():
        o_ref[...] = x_ref[...]

    a = o_ref[0].astype(compute_dtype)                       # (Cp, Lf)

    m_ym1 = mask_ref[0:1, :]                                  # dy = -1 valid
    m_yp1 = mask_ref[1:2, :]                                  # dy = +1 valid
    m_xm1 = mask_ref[2:3, :]                                  # dx = -1 valid
    m_xp1 = mask_ref[3:4, :]                                  # dx = +1 valid

    # Vertical taps (2 rolls).  Masks implement the "SAME" zero padding and
    # also kill any cross-row / cross-image wrap introduced by the lane roll.
    a_ym1 = pltpu.roll(a, W, 1) * m_ym1                       # value at p: a[p-W]
    a_yp1 = pltpu.roll(a, Lf - W, 1) * m_yp1                  # value at p: a[p+W]

    # dx = 0 column goes straight into its patch slot; read it back as one
    # (3*Cp, Lf) block and derive the dx = -1 / +1 columns with 2 more rolls.
    patch_ref[3 * Cp:4 * Cp, :] = a_ym1
    patch_ref[4 * Cp:5 * Cp, :] = a
    patch_ref[5 * Cp:6 * Cp, :] = a_yp1
    s_x0 = patch_ref[3 * Cp:6 * Cp, :]
    patch_ref[0:3 * Cp, :] = pltpu.roll(s_x0, 1, 1) * m_xm1       # dx = -1
    patch_ref[6 * Cp:9 * Cp, :] = pltpu.roll(s_x0, Lf - 1, 1) * m_xp1  # dx = +1

    # One fat lane-dense matmul per layer: (Cp, 9Cp) @ (9Cp, Lf) -> (Cp, Lf).
    acc = jnp.dot(w_ref[l], patch_ref[...], preferred_element_type=jnp.float32)

    # Write back in f32: feeds the next layer; DMAed to HBM when n changes.
    o_ref[0] = acc.astype(o_ref.dtype)


def prepare_params(w3_all, w1_all, compute_dtype=jnp.bfloat16):
    """One-time weight preprocessing (hoisted out of the forward pass).

    Folds the 1x1 conv into the centre tap of the 3x3 conv, zero-pads the
    channels to the sublane granule, and flattens to the (Co, kx, ky, Ci)
    contraction layout used by the in-kernel patch matrix.
    """
    L, C = w3_all.shape[0], w3_all.shape[1]
    granule = 8 * (4 // jnp.dtype(compute_dtype).itemsize)    # 8 f32 / 16 bf16
    Cp = _round_up(C, granule)
    w_eff = w3_all.at[:, :, :, 1, 1].add(w1_all)              # (L, Co, Ci, 3, 3)
    w_pad = jnp.zeros((L, Cp, Cp, 3, 3), w3_all.dtype).at[:, :C, :C].set(w_eff)
    # patch row index = kx*3*Cp + ky*Cp + ci  ->  transpose to (L, Co, kx, ky, Ci)
    w_flat = jnp.transpose(w_pad, (0, 1, 4, 3, 2)).reshape(L, Cp, 9 * Cp)
    return w_flat.astype(compute_dtype)


def _build_masks(H, W, n_tile, compute_dtype):
    """(4, n_tile*H*W) 0/1 boundary masks, periodic per image."""
    pos = jnp.arange(n_tile * H * W, dtype=jnp.int32) % (H * W)
    ypos = pos // W
    xpos = pos % W
    return jnp.stack([ypos >= 1, ypos <= H - 2,
                      xpos >= 1, xpos <= W - 2]).astype(compute_dtype)


def res_connection_forward(x, w_flat, *, n_tile=1, compute_dtype=jnp.bfloat16):
    """x: (N, C, H, W); w_flat: (L, Cp, 9*Cp) from prepare_params."""
    N, C, H, W = x.shape
    L, Cp, _ = w_flat.shape
    HW = H * W
    assert N % n_tile == 0
    n_tiles = N // n_tile
    Lf = n_tile * HW

    # Pad channels and fold n_tile images into the lane axis: (n_tiles, Cp, Lf).
    x_p = jnp.zeros((N, Cp, HW), x.dtype).at[:, :C, :].set(x.reshape(N, C, HW))
    x_p = (x_p.reshape(n_tiles, n_tile, Cp, HW)
               .transpose(0, 2, 1, 3)
               .reshape(n_tiles, Cp, Lf))

    masks = _build_masks(H, W, n_tile, compute_dtype)

    cb = jnp.dtype(compute_dtype).itemsize
    vmem_est = (9 * Cp * Lf * cb                 # patch scratch
                + L * Cp * 9 * Cp * cb           # resident weights
                + 4 * Lf * cb                    # masks
                + 2 * 2 * Cp * Lf * x.dtype.itemsize)  # double-buffered x / out
    vmem_limit = int(min(max(2 * vmem_est, 32 << 20), 64 << 20))  # v7x-safe cap

    out = pl.pallas_call(
        functools.partial(fused_basic_blocks_kernel, W=W, Cp=Cp,
                          compute_dtype=compute_dtype),
        out_shape=jax.ShapeDtypeStruct((n_tiles, Cp, Lf), x.dtype),
        grid=(n_tiles, L),
        in_specs=[
            pl.BlockSpec((1, Cp, Lf), lambda n, l: (n, 0, 0)),
            pl.BlockSpec((L, Cp, 9 * Cp), lambda n, l: (0, 0, 0)),  # resident
            pl.BlockSpec((4, Lf), lambda n, l: (0, 0)),             # resident
        ],
        out_specs=pl.BlockSpec((1, Cp, Lf), lambda n, l: (n, 0, 0)),
        scratch_shapes=[pltpu.VMEM((9 * Cp, Lf), compute_dtype)],
        compiler_params=pltpu.CompilerParams(
            dimension_semantics=("parallel", "arbitrary"),
            vmem_limit_bytes=vmem_limit),
    )(x_p, w_flat, masks)

    out = (out.reshape(n_tiles, Cp, n_tile, HW)
              .transpose(0, 2, 1, 3)
              .reshape(N, Cp, H, W)[:, :C])
    return out


def init_res_connection_params(key, channel, num_layer):
    """Deterministic synthetic init: stacked (w3, w1) for all BasicBlocks."""
    k3, k1 = jax.random.split(key)
    w3_all = (jax.random.normal(
        k3, (num_layer, channel, channel, 3, 3), jnp.float32)
        / jnp.sqrt(channel * 9.0))
    w1_all = (jax.random.normal(
        k1, (num_layer, channel, channel), jnp.float32)
        / jnp.sqrt(float(channel)))
    return w3_all, w1_all


def _ref_block(x, w3, w1):
    dn = ('NCHW', 'OIHW', 'NCHW')
    y3 = jax.lax.conv_general_dilated(x, w3, (1, 1), 'SAME',
                                      dimension_numbers=dn)
    y1 = jax.lax.conv_general_dilated(x, w1[:, :, None, None], (1, 1), 'SAME',
                                      dimension_numbers=dn)
    return y3 + y1


if __name__ == "__main__":
    key = jax.random.PRNGKey(0)
    kx, kp = jax.random.split(key)

    N, C, H, W = 2, 4, 16, 16
    num_layer = 2

    x = jax.random.normal(kx, (N, C, H, W), jnp.float32)
    w3_all, w1_all = init_res_connection_params(kp, C, num_layer)

    # Pure-JAX reference (same math as the PyTorch module).
    ref = x
    for i in range(num_layer):
        ref = _ref_block(ref, w3_all[i], w1_all[i])
    ref = jax.block_until_ready(ref)

    # 1) f32 path, n_tile=1 (>=2 parallel blocks -> both v7x TCs busy).
    w_f32 = prepare_params(w3_all, w1_all, compute_dtype=jnp.float32)
    fwd_f32 = jax.jit(functools.partial(res_connection_forward,
                                        n_tile=1, compute_dtype=jnp.float32))
    out_f32 = jax.block_until_ready(fwd_f32(x, w_f32))
    assert out_f32.shape == (N, C, H, W)
    err_f32 = float(jnp.max(jnp.abs(out_f32 - ref)))
    assert jnp.allclose(out_f32, ref, atol=1e-4, rtol=1e-4), err_f32

    # 2) bf16 fast path with the batch folded into the matmul RHS (n_tile=2);
    #    also exercises the cross-image mask correctness.  f32 accumulation,
    #    bf16-appropriate tolerance.
    w_bf16 = prepare_params(w3_all, w1_all, compute_dtype=jnp.bfloat16)
    fwd_bf16 = jax.jit(functools.partial(res_connection_forward,
                                         n_tile=2, compute_dtype=jnp.bfloat16))
    out_bf16 = jax.block_until_ready(fwd_bf16(x, w_bf16))
    assert out_bf16.shape == (N, C, H, W)
    err_bf16 = float(jnp.max(jnp.abs(out_bf16 - ref)))
    assert jnp.allclose(out_bf16, ref, atol=1e-1, rtol=5e-2), err_bf16

    print("KERNEL_OK")
</pallas_src>

<mosaic_0001>
module attributes {stable_mosaic.version = 11 : i64} {
  func.func @fused_basic_blocks_kernel(%arg0: i32, %arg1: i32, %arg2: memref<1x8x256xf32, #tpu.memory_space<vmem>>, %arg3: memref<2x8x72xf32, #tpu.memory_space<vmem>>, %arg4: memref<4x256xf32, #tpu.memory_space<vmem>>, %arg5: memref<1x8x256xf32, #tpu.memory_space<vmem>>, %arg6: memref<72x256xf32, #tpu.memory_space<vmem>>) attributes {dimension_semantics = [#tpu.dimension_semantics<parallel>, #tpu.dimension_semantics<arbitrary>], iteration_bounds = array<i64: 2, 2>, scalar_prefetch = 0 : i64, scratch_operands = 1 : i64, tpu.core_type = #tpu.core_type<tc>, window_params = [{transform_indices = @transform_0, window_bounds = array<i64: 1, 8, 256>}, {pipeline_mode = #tpu.pipeline_mode<synchronous>, transform_indices = @transform_1, window_bounds = array<i64: 2, 8, 72>}, {pipeline_mode = #tpu.pipeline_mode<synchronous>, transform_indices = @transform_2, window_bounds = array<i64: 4, 256>}, {transform_indices = @transform_3, window_bounds = array<i64: 1, 8, 256>}]} {
    %c0_i32 = arith.constant 0 : i32
    %0 = arith.cmpi eq, %arg1, %c0_i32 : i32
    %1 = arith.extui %0 : i1 to i32
    %c0_i32_0 = arith.constant 0 : i32
    %2 = arith.cmpi ne, %1, %c0_i32_0 : i32
    scf.if %2 {
      %c0_23 = arith.constant 0 : index
      %c0_24 = arith.constant 0 : index
      %c0_25 = arith.constant 0 : index
      %35 = vector.load %arg2[%c0_23, %c0_24, %c0_25] : memref<1x8x256xf32, #tpu.memory_space<vmem>>, vector<1x8x256xf32>
      %c0_26 = arith.constant 0 : index
      %c0_27 = arith.constant 0 : index
      %c0_28 = arith.constant 0 : index
      %36 = vector.load %arg5[%c0_26, %c0_27, %c0_28] : memref<1x8x256xf32, #tpu.memory_space<vmem>>, vector<1x8x256xf32>
      tpu.vector_store %arg5[%c0_26, %c0_27, %c0_28], %35 {strides = array<i32>} : memref<1x8x256xf32, #tpu.memory_space<vmem>>, vector<1x8x256xf32>,
    } else {
    }
    %c0 = arith.constant 0 : index
    %c0_1 = arith.constant 0 : index
    %c0_2 = arith.constant 0 : index
    %3 = vector.load %arg5[%c0, %c0_1, %c0_2] : memref<1x8x256xf32, #tpu.memory_space<vmem>>, vector<1x8x256xf32>
    %4 = vector.shape_cast %3 : vector<1x8x256xf32> to vector<8x256xf32>
    %c0_3 = arith.constant 0 : index
    %c0_4 = arith.constant 0 : index
    %5 = vector.load %arg4[%c0_3, %c0_4] : memref<4x256xf32, #tpu.memory_space<vmem>>, vector<1x256xf32>
    %c1 = arith.constant 1 : index
    %c0_5 = arith.constant 0 : index
    %6 = vector.load %arg4[%c1, %c0_5] : memref<4x256xf32, #tpu.memory_space<vmem>>, vector<1x256xf32>
    %c2 = arith.constant 2 : index
    %c0_6 = arith.constant 0 : index
    %7 = vector.load %arg4[%c2, %c0_6] : memref<4x256xf32, #tpu.memory_space<vmem>>, vector<1x256xf32>
    %c3 = arith.constant 3 : index
    %c0_7 = arith.constant 0 : index
    %8 = vector.load %arg4[%c3, %c0_7] : memref<4x256xf32, #tpu.memory_space<vmem>>, vector<1x256xf32>
    %c16_i32 = arith.constant 16 : i32
    %9 = tpu.dynamic_rotate %4 by %c16_i32 dim 1 : vector<8x256xf32>, i32 -> vector<8x256xf32>
    %10 = vector.broadcast %5 : vector<1x256xf32> to vector<8x256xf32>
    %11 = arith.mulf %9, %10 : vector<8x256xf32>
    %c240_i32 = arith.constant 240 : i32
    %12 = tpu.dynamic_rotate %4 by %c240_i32 dim 1 : vector<8x256xf32>, i32 -> vector<8x256xf32>
    %13 = vector.broadcast %6 : vector<1x256xf32> to vector<8x256xf32>
    %14 = arith.mulf %12, %13 : vector<8x256xf32>
    %c24 = arith.constant 24 : index
    %c0_8 = arith.constant 0 : index
    %15 = vector.load %arg6[%c24, %c0_8] : memref<72x256xf32, #tpu.memory_space<vmem>>, vector<8x256xf32>
    tpu.vector_store %arg6[%c24, %c0_8], %11 {strides = array<i32>} : memref<72x256xf32, #tpu.memory_space<vmem>>, vector<8x256xf32>,
    %c32 = arith.constant 32 : index
    %c0_9 = arith.constant 0 : index
    %16 = vector.load %arg6[%c32, %c0_9] : memref<72x256xf32, #tpu.memory_space<vmem>>, vector<8x256xf32>
    tpu.vector_store %arg6[%c32, %c0_9], %4 {strides = array<i32>} : memref<72x256xf32, #tpu.memory_space<vmem>>, vector<8x256xf32>,
    %c40 = arith.constant 40 : index
    %c0_10 = arith.constant 0 : index
    %17 = vector.load %arg6[%c40, %c0_10] : memref<72x256xf32, #tpu.memory_space<vmem>>, vector<8x256xf32>
    tpu.vector_store %arg6[%c40, %c0_10], %14 {strides = array<i32>} : memref<72x256xf32, #tpu.memory_space<vmem>>, vector<8x256xf32>,
    %c24_11 = arith.constant 24 : index
    %c0_12 = arith.constant 0 : index
    %18 = vector.load %arg6[%c24_11, %c0_12] : memref<72x256xf32, #tpu.memory_space<vmem>>, vector<24x256xf32>
    %c1_i32 = arith.constant 1 : i32
    %19 = tpu.dynamic_rotate %18 by %c1_i32 dim 1 : vector<24x256xf32>, i32 -> vector<24x256xf32>
    %20 = vector.broadcast %7 : vector<1x256xf32> to vector<24x256xf32>
    %21 = arith.mulf %19, %20 : vector<24x256xf32>
    %c0_13 = arith.constant 0 : index
    %c0_14 = arith.constant 0 : index
    %22 = vector.load %arg6[%c0_13, %c0_14] : memref<72x256xf32, #tpu.memory_space<vmem>>, vector<24x256xf32>
    tpu.vector_store %arg6[%c0_13, %c0_14], %21 {strides = array<i32>} : memref<72x256xf32, #tpu.memory_space<vmem>>, vector<24x256xf32>,
    %c255_i32 = arith.constant 255 : i32
    %23 = tpu.dynamic_rotate %18 by %c255_i32 dim 1 : vector<24x256xf32>, i32 -> vector<24x256xf32>
    %24 = vector.broadcast %8 : vector<1x256xf32> to vector<24x256xf32>
    %25 = arith.mulf %23, %24 : vector<24x256xf32>
    %c48 = arith.constant 48 : index
    %c0_15 = arith.constant 0 : index
    %26 = vector.load %arg6[%c48, %c0_15] : memref<72x256xf32, #tpu.memory_space<vmem>>, vector<24x256xf32>
    tpu.vector_store %arg6[%c48, %c0_15], %25 {strides = array<i32>} : memref<72x256xf32, #tpu.memory_space<vmem>>, vector<24x256xf32>,
    %27 = arith.index_cast %arg1 : i32 to index
    %c0_16 = arith.constant 0 : index
    %c0_17 = arith.constant 0 : index
    %28 = vector.load %arg3[%27, %c0_16, %c0_17] : memref<2x8x72xf32, #tpu.memory_space<vmem>>, vector<1x8x72xf32>
    %29 = vector.shape_cast %28 : vector<1x8x72xf32> to vector<8x72xf32>
    %c0_18 = arith.constant 0 : index
    %c0_19 = arith.constant 0 : index
    %30 = vector.load %arg6[%c0_18, %c0_19] : memref<72x256xf32, #tpu.memory_space<vmem>>, vector<72x256xf32>
    %cst = arith.constant dense<0.000000e+00> : vector<8x256xf32>
    %31 = tpu.matmul %29, %30, %cst {dimension_numbers = #tpu.dot_dimension_numbers<[1], [0], [0], [1], [0, 0, 1, 1], [], []>} : vector<8x72xf32>, vector<72x256xf32>, vector<8x256xf32> -> vector<8x256xf32>
    %c0_20 = arith.constant 0 : index
    %c0_21 = arith.constant 0 : index
    %c0_22 = arith.constant 0 : index
    %32 = vector.load %arg5[%c0_20, %c0_21, %c0_22] : memref<1x8x256xf32, #tpu.memory_space<vmem>>, vector<1x8x256xf32>
    %33 = vector.shape_cast %32 : vector<1x8x256xf32> to vector<8x256xf32>
    %34 = vector.shape_cast %31 : vector<8x256xf32> to vector<1x8x256xf32>
    tpu.vector_store %arg5[%c0_20, %c0_21, %c0_22], %34 {strides = array<i32>} : memref<1x8x256xf32, #tpu.memory_space<vmem>>, vector<1x8x256xf32>,
    return
  }
  func.func @transform_0(%arg0: i32, %arg1: i32) -> (i32, i32, i32) {
    %c0_i32 = arith.constant 0 : i32
    %c0_i32_0 = arith.constant 0 : i32
    %c0_i32_1 = arith.constant 0 : i32
    return %arg0, %c0_i32, %c0_i32_0 : i32, i32, i32
  }
  func.func @transform_1(%arg0: i32, %arg1: i32) -> (i32, i32, i32) {
    %c0_i32 = arith.constant 0 : i32
    %c0_i32_0 = arith.constant 0 : i32
    %c0_i32_1 = arith.constant 0 : i32
    %c0_i32_2 = arith.constant 0 : i32
    return %c0_i32, %c0_i32_0, %c0_i32_1 : i32, i32, i32
  }
  func.func @transform_2(%arg0: i32, %arg1: i32) -> (i32, i32) {
    %c0_i32 = arith.constant 0 : i32
    %c0_i32_0 = arith.constant 0 : i32
    %c0_i32_1 = arith.constant 0 : i32
    return %c0_i32, %c0_i32_0 : i32, i32
  }
  func.func @transform_3(%arg0: i32, %arg1: i32) -> (i32, i32, i32) {
    %c0_i32 = arith.constant 0 : i32
    %c0_i32_0 = arith.constant 0 : i32
    %c0_i32_1 = arith.constant 0 : i32
    return %arg0, %c0_i32, %c0_i32_0 : i32, i32, i32
  }
}

</mosaic_0001>

<bundles_post_ra>
// kernel: res_connection_forward.1
= control target key start
LH: loop header
LB: loop body
LE: loop exit
PB: predicated region body
PF: predicated region fallthrough
CT: control target
= control target key end

     0   :  { %s649_s12 = smov 0   ;;  %s651_s13 = smov 0   ;;  %s793_s0 = inlined_call_operand.vmem [shape: f32[2,8,256], index: 0, kind: input, shape index: {}]   ;;  %s794_s1 = inlined_call_operand.vmem [shape: f32[2,8,72], index: 1, kind: input, shape index: {}]   ;;  %s795_s2 = inlined_call_operand.vmem [shape: f32[4,256], index: 2, kind: input, shape index: {}]   ;;  %s796_s3 = inlined_call_operand.vmem [shape: f32[2,8,256], index: 3, kind: output, shape index: {}]  }
   0x1   :  { %s653_s14 = smov 0   ;;  %s655_s15 = smov 0  }
   0x2   :  { %s657_s16 = smov 0  }
   0x3 LB: > { %s22_s17 = sadd.s32 1, %s614_s14  ;;  %s25_s18 = sadd.s32 1, %s618_s15  ;;  %s622_s16 = sphi %s657_s16, %s13_s16   ;;  %s618_s15 = sphi %s655_s15, %s800_s15   ;;  %s614_s14 = sphi %s653_s14, %s799_s14   ;;  %s610_s13 = sphi %s651_s13, %s798_s13   ;;  %s606_s12 = sphi %s649_s12, %s797_s12  }
   0x4   : > { %p23_p0 = scmp.ge.s32.totalorder %s22_s17, 2  ;;  %p508_p1 = scmp.ge.s32.totalorder %s622_s16, 1 }
   0x5   : > { %p149_p2 = scmp.lt.s32.totalorder %s622_s16, 5 }
   0x6   : > { %s802_s17 = smov (%p23_p0, %s22_s17), 0  ;;  %s804_s18 = smov (!%p23_p0, %s25_s18), %s618_s15 }
   0x7   : > { %p150_p3 = pnand %p508_p1, %p149_p2  ;;  %p27_p4 = scmp.ge.s32.totalorder %s804_s18, 2 }
   0x8   : > { %p173_p5 = scmp.lt.s32.totalorder (!%p150_p3), %s610_s13, 1  ;;  %p513_p6 = scmp.ne.s32.totalorder (!%p150_p3), %s606_s12, 0 }
   0x9   : > { %s806_s18 = smov (%p27_p4, %s804_s18), 0  ;;  %153 = sbr.rel (%p150_p3) target bundleno = 506 (0x1fa), region = 32 }
  0x10   : > { %s808_s13 = smov (!%p173_p5, %s610_s13), 1  ;;  %186 = sbr.rel (%p513_p6) target bundleno = 23 (0x17), region = 36 }
  0x11   : > { %s521_s19 = sshll.u32 %s808_s13, 4 }
  0x12   : > { %s177_s22 = scalar_lea.vmem %s793_s0, %s521_s19  ;;  %s687_s25 = scalar_lea.vmem %s796_s3, %s521_s19 }
  0x13   : > { %v187_v0 = vld [vmem:[%s177_s22] sm:$0xff] (!%p513_p6)  ;;  %v188_v1 = vld [vmem:[%s177_s22 + $0x8] sm:$0xff] (!%p513_p6) }
  0x14   : > { %189 = vst [vmem:[%s687_s25] sm:$0xff] (!%p513_p6), %v187_v0  ;;  %190 = vst [vmem:[%s687_s25 + $0x8] sm:$0xff] (!%p513_p6), %v188_v1 }
  0x17 PF: > { %s624_s26 = smov 112   ;;  %s625_s27 = smov 16   ;;  %v204_v4 = vlaneseq  ;;  %v514_v9 = vld [vmem:[%s795_s2 + $0x1] ss:$4 sm:$0x3]  ;;  %v628_v27 = vmov 0.0  }
  0x18   : > { %s626_s28 = smov 1   ;;  %v193_v10 = vld [vmem:[%s795_s2] ss:$4 sm:$0x3]  ;;  %s627_s6 = smov 127   ;;  %427 = vmatprep.mubr.f32.mxu0 %v628_v27  ;;  %vm359_vm4 = vcmask 588800  }
  0x19   : > { %v211_v5 = vshrl.u32 %v204_v4, 7  ;;  %v706_v6 = vand.u32 127, %v204_v4  ;;  %v515_v30 = vld [vmem:[%s795_s2 + $0x2] ss:$4 sm:$0x3]  ;;  %s517_s11 = sshll.u32 %s606_s12, 3 }
  0x1a   : > { %v516_v52 = vld [vmem:[%s795_s2 + $0x3] ss:$4 sm:$0x3]  ;;  %s339_s20 = scalar_lea.vmem %s794_s1, %s517_s11 }
  0x1b   : > { %v693_v2 = vld [vmem:[%s687_s25] sm:$0xff]  ;;  %v698_v3 = vld [vmem:[%s687_s25 + $0x8] sm:$0xff]  ;;  %v708_v7 = vsub.s32 0, %v211_v5  ;;  %v710_v8 = vsub.s32 1, %v211_v5  ;;  %vm226_vm0 = vcmp.lt.s32.totalorder %v706_v6, 112  ;;  %vm206_vm1 = vcmp.lt.s32.totalorder %v706_v6, 16 }
  0x1c   : > { %222 = vrot.lane.b32.xlu1 %v693_v2, %s624_s26  ;;  %200 = vrot.lane.b32.xlu0 %v693_v2, %s625_s27  ;;  %vm266_vm2 = vcmp.lt.s32.totalorder %v706_v6, 1  ;;  %vm308_vm3 = vcmp.lt.s32.totalorder %v706_v6, 127 }
  0x1d   : > { %v237_v13 = vrot.slane %v514_v9, %v710_v8  ;;  %v213_v14 = vrot.slane %v193_v10, %v708_v7  ;;  %v217_v20 = vrot.slane %v193_v10, %v710_v8  ;;  %v233_v23 = vrot.slane %v514_v9, %v708_v7 }
  0x1e   : > { %v277_v32 = vrot.slane %v515_v30, %v708_v7  ;;  %v281_v34 = vrot.slane %v515_v30, %v710_v8  ;;  %v319_v56 = vrot.slane %v516_v52, %v708_v7  ;;  %v323_v57 = vrot.slane %v516_v52, %v710_v8 }
  0x20   : > { %224 = vrot.lane.b32.xlu1 %v698_v3, %s624_s26  ;;  %202 = vrot.lane.b32.xlu0 %v698_v3, %s625_s27 }
  0x24   : > { %256 = vrot.lane.b32.xlu1 %v693_v2, %s626_s28 }
  0x28   : > { %262 = vrot.lane.b32.xlu1 %v698_v3, %s626_s28 }
  0x8e   : > { %v223_v11 = vpop.permute.xlu1 %222  ;;  %v201_v12 = vpop.permute.xlu0 %200 }
  0x92   : > { %v225_v15 = vpop.permute.xlu1 %224  ;;  %v203_v16 = vpop.permute.xlu0 %202 }
  0x93   : > { %v228_v17 = vsel %vm226_vm0, %v225_v15, %v223_v11  ;;  %v208_v18 = vsel %vm206_vm1, %v203_v16, %v201_v12  ;;  %v207_v22 = vsel %vm206_vm1, %v201_v12, %v203_v16  ;;  %v227_v25 = vsel %vm226_vm0, %v223_v11, %v225_v15  ;;  %v340_v15 = vld [vmem:[%s339_s20] sm:$0xff] }
  0x94   : > { %v241_v19 = vmul.f32 %v237_v13, %v228_v17  ;;  %v220_v21 = vmul.f32 %v213_v14, %v208_v18  ;;  %v221_v24 = vmul.f32 %v217_v20, %v207_v22  ;;  %v240_v26 = vmul.f32 %v233_v23, %v227_v25 }
  0x96   : > { %264 = vrot.lane.b32.xlu1 %v241_v19, %s626_s28  ;;  %254 = vrot.lane.b32.xlu0 %v220_v21, %s626_s28  ;;  %v257_v28 = vpop.permute.xlu1 %256  ;;  %v531_v59 = vpack.c.bf16 %v241_v19, %v698_v3  ;;  %v533_v1 = vpack.c.bf16 %v240_v26, %v693_v2 }
  0x9a   : > { %298 = vrot.lane.b32.xlu1 %v693_v2, %s627_s6  ;;  %260 = vrot.lane.b32.xlu0 %v221_v24, %s626_s28  ;;  %v263_v29 = vpop.permute.xlu1 %262 }
  0x9b   : > { %v268_v35 = vsel %vm266_vm2, %v257_v28, %v263_v29  ;;  %v271_v36 = vsel %vm266_vm2, %v263_v29, %v257_v28 }
  0x9c   : > { %v286_v40 = vmul.f32 %v277_v32, %v271_v36  ;;  %v287_v43 = vmul.f32 %v281_v34, %v268_v35 }
  0x9e   : > { %304 = vrot.lane.b32.xlu1 %v698_v3, %s627_s6  ;;  %258 = vrot.lane.b32.xlu0 %v240_v26, %s626_s28 }
  0xa2   : > { %306 = vrot.lane.b32.xlu1 %v241_v19, %s627_s6  ;;  %296 = vrot.lane.b32.xlu0 %v220_v21, %s627_s6 }
  0xa6   : > { %302 = vrot.lane.b32.xlu0 %v221_v24, %s627_s6 }
  0xaa   : > { %300 = vrot.lane.b32.xlu0 %v240_v26, %s627_s6 }
 0x108   : > { %v255_v31 = vpop.permute.xlu0 %254  ;;  %v265_v33 = vpop.permute.xlu1 %264 }
 0x10c   : > { %v261_v37 = vpop.permute.xlu0 %260  ;;  %v299_v44 = vpop.permute.xlu1 %298 }
 0x10d   : > { %v267_v38 = vsel %vm266_vm2, %v255_v31, %v261_v37  ;;  %v270_v39 = vsel %vm266_vm2, %v261_v37, %v255_v31 }
 0x10e   : > { %v284_v41 = vmul.f32 %v277_v32, %v270_v39  ;;  %v285_v42 = vmul.f32 %v281_v34, %v267_v38 }
 0x110   : > { %v259_v45 = vpop.permute.xlu0 %258  ;;  %v523_v46 = vpack.c.bf16 %v287_v43, %v285_v42  ;;  %v525_v47 = vpack.c.bf16 %v286_v40, %v284_v41  ;;  %v305_v58 = vpop.permute.xlu1 %304 }
 0x111   : > { %v269_v48 = vsel %vm266_vm2, %v259_v45, %v265_v33  ;;  %v272_v49 = vsel %vm266_vm2, %v265_v33, %v259_v45  ;;  %v310_v60 = vsel %vm308_vm3, %v299_v44, %v305_v58  ;;  %v313_v61 = vsel %vm308_vm3, %v305_v58, %v299_v44 }
 0x112   : > { %v288_v50 = vmul.f32 %v277_v32, %v272_v49  ;;  %v289_v51 = vmul.f32 %v281_v34, %v269_v48  ;;  %524 = vmatprep.subr.bf16.mxu0 %v523_v46  ;;  %v328_v4 = vmul.f32 %v319_v56, %v310_v60  ;;  %v329_v5 = vmul.f32 %v323_v57, %v313_v61 }
 0x113   : > { %526 = vmatpush1.bf16.msra.mxu0 %v525_v47 }
 0x114   : > { %v297_v53 = vpop.permute.xlu0 %296  ;;  %v527_v54 = vpack.c.bf16 %v221_v24, %v289_v51  ;;  %v529_v55 = vpack.c.bf16 %v220_v21, %v288_v50  ;;  %v307_v8 = vpop.permute.xlu1 %306 }
 0x116   : > { %528 = vmatprep.subr.bf16.mxu0 %v527_v54 }
 0x117   : > { %530 = vmatpush1.bf16.msra.mxu0 %v529_v55 }
 0x118   : > { %532 = vmatprep.subr.bf16.mxu0 %v531_v59  ;;  %v303_v62 = vpop.permute.xlu0 %302 }
 0x119   : > { %v309_v63 = vsel %vm308_vm3, %v297_v53, %v303_v62  ;;  %v312_v0 = vsel %vm308_vm3, %v303_v62, %v297_v53 }
 0x11a   : > { %v326_v3 = vmul.f32 %v319_v56, %v309_v63  ;;  %v327_v7 = vmul.f32 %v323_v57, %v312_v0 }
 0x11b   : > { %534 = vmatpush1.bf16.msra.mxu0 %v533_v1 }
 0x11c   : > { %v301_v9 = vpop.permute.xlu0 %300  ;;  %v535_v10 = vpack.c.bf16 %v329_v5, %v327_v7  ;;  %v537_v11 = vpack.c.bf16 %v328_v4, %v326_v3 }
 0x11d   : > { %v314_v12 = vsel %vm308_vm3, %v307_v8, %v301_v9  ;;  %v311_v13 = vsel %vm308_vm3, %v301_v9, %v307_v8 }
 0x11e   : > { %v331_v14 = vmul.f32 %v323_v57, %v314_v12  ;;  %536 = vmatprep.subr.bf16.mxu0 %v535_v10  ;;  %v330_v2 = vmul.f32 %v319_v56, %v311_v13 }
 0x11f   : > { %538 = vmatpush1.bf16.msra.mxu0 %v537_v11 }
 0x120   : > { %379 = vmatprep.subr.mxu0 %v331_v14 }
 0x123   : > { %380 = vmatpush1.msra.mxu0 %v330_v2 }
 0x124   : > { %518 = vmatmul.mubr.msk.f32.vlgmr.msra.gmra.mrb[0].mxu0 %vm359_vm4, %v340_v15 }
 0x1f7   : > { %v429_v16 = vpop.f32.mrb[0].mxu0 }
 0x1f8   : > { %434 = vst [vmem:[%s687_s25] sm:$0xff] %v429_v16  ;;  %v431_v17 = vpop.f32.mrb[1].mxu0 }
 0x1f9   : > { %435 = vst [vmem:[%s687_s25 + $0x8] sm:$0xff] %v431_v17 }
 0x1fa PF: > { %s13_s16 = sadd.s32 1, %s622_s16   ;;  %s797_s12 = smov %s614_s14 }
 0x1fb   : > { %p10_p7 = scmp.ge.s32.totalorder %s13_s16, 6   ;;  %s798_s13 = smov %s618_s15 }
 0x1fc   : > { %s799_s14 = smov %s802_s17  ;;  %s800_s15 = smov %s806_s18 }
 0x1fd   :  { %12 = sbr.rel (!%p10_p7) target bundleno = 3 (0x3), region = 70 }

</bundles_post_ra>
